<compile_context>
chip_gen: v7x
topology: tpu7x:2x2x1
jax: 0.10.0
libtpu: 0.0.40
codegen_flags: <defaults>
</compile_context>

<pallas_src>
import jax
import jax.numpy as jnp
from jax.experimental import pallas as pl
from jax.experimental.pallas import tpu as pltpu

HIDDEN = 256


def _round_up(v, m):
    return ((v + m - 1) // m) * m


def actor_kernel(x_ref, w1_ref, b1_ref, w2_ref, b2_ref, w3_ref, b3_ref,
                 probs_ref):
    # Layer 1: Linear(input_dims, 256) + ReLU  (bf16 MXU matmul, f32 acc)
    x = x_ref[...].astype(jnp.bfloat16)
    h1 = jnp.dot(x, w1_ref[...], preferred_element_type=jnp.float32)
    h1 = jnp.maximum(h1 + b1_ref[...], 0.0)

    # Layer 2: Linear(256, 256) + ReLU
    h2 = jnp.dot(h1.astype(jnp.bfloat16), w2_ref[...],
                 preferred_element_type=jnp.float32)
    h2 = jnp.maximum(h2 + b2_ref[...], 0.0)

    # Layer 3: Linear(256, n_actions) — un-padded, tiny-N MXU matmul.
    logits = jnp.dot(h2.astype(jnp.bfloat16), w3_ref[...],
                     preferred_element_type=jnp.float32)
    logits = logits + b3_ref[...]

    # Numerically stable softmax over the action axis. Exact division so each
    # row sums to 1 within f32 rounding (needed for PPO log-probs / entropy).
    m = jnp.max(logits, axis=-1, keepdims=True)
    e = jnp.exp(logits - m)
    denom = jnp.sum(e, axis=-1, keepdims=True)
    probs_ref[...] = e / denom


def actor_net_forward(x, params, tile_b=None):
    """Run the ActorNet forward pass. Returns action probabilities (the
    parameters of the Categorical distribution), shape (batch, n_actions)."""
    w1, b1, w2, b2, w3, b3 = params
    batch, input_dims = x.shape
    n_actions = w3.shape[1]

    # Batch-tile heuristic (kernel is HBM/overhead-bound, not MXU-bound):
    #  * small batch  -> round to 8 rows, single tile, minimal padding work
    #  * medium batch -> ~batch/2 so v7x's second TensorCore has a grid step
    #  * large batch  -> 512 rows/step to amortize per-step overhead while
    #    fitting v5e's 16 MiB scoped-VMEM default with double buffering.
    if tile_b is None:
        if batch <= 128:
            tile_b = _round_up(batch, 8) if batch >= 8 else batch
        elif batch <= 1024:
            tile_b = _round_up(pl.cdiv(batch, 2), 8)
        else:
            tile_b = 512

    grid = (pl.cdiv(batch, tile_b),)
    const = lambda i: (0, 0)  # weights/biases: same block every step -> resident

    flops = 2 * batch * (input_dims * HIDDEN + HIDDEN * HIDDEN
                         + HIDDEN * n_actions)
    bytes_accessed = (
        batch * input_dims * 4                                           # x
        + (input_dims * HIDDEN + HIDDEN * HIDDEN + HIDDEN * n_actions) * 2  # bf16 W
        + (2 * HIDDEN + n_actions) * 4                                   # biases
        + batch * n_actions * 4)                                         # probs
    cost = pl.CostEstimate(flops=flops,
                           transcendentals=batch * n_actions,
                           bytes_accessed=bytes_accessed)

    return pl.pallas_call(
        actor_kernel,
        out_shape=jax.ShapeDtypeStruct((batch, n_actions), jnp.float32),
        grid_spec=pltpu.PrefetchScalarGridSpec(
            num_scalar_prefetch=0,
            grid=grid,
            in_specs=[
                pl.BlockSpec((tile_b, input_dims), lambda i: (i, 0)),  # x tile
                pl.BlockSpec((input_dims, HIDDEN), const),             # w1
                pl.BlockSpec((1, HIDDEN), const),                      # b1
                pl.BlockSpec((HIDDEN, HIDDEN), const),                 # w2
                pl.BlockSpec((1, HIDDEN), const),                      # b2
                pl.BlockSpec((HIDDEN, n_actions), const),              # w3
                pl.BlockSpec((1, n_actions), const),                   # b3
            ],
            out_specs=pl.BlockSpec((tile_b, n_actions), lambda i: (i, 0)),
        ),
        compiler_params=pltpu.CompilerParams(
            dimension_semantics=("parallel",)),
        cost_estimate=cost,
    )(x, w1, b1, w2, b2, w3, b3)


def init_params(key, input_dims, n_actions, hidden=HIDDEN):
    """Deterministic synthetic parameters (PyTorch Linear shapes, transposed
    to (in, out)). Weights stored in bfloat16, biases in float32."""
    k1, k2, k3, k4, k5, k6 = jax.random.split(key, 6)
    scale1 = 1.0 / jnp.sqrt(input_dims)
    scale2 = 1.0 / jnp.sqrt(hidden)
    w1 = (jax.random.normal(k1, (input_dims, hidden), jnp.float32)
          * scale1).astype(jnp.bfloat16)
    b1 = jax.random.normal(k4, (1, hidden), jnp.float32) * 0.01
    w2 = (jax.random.normal(k2, (hidden, hidden), jnp.float32)
          * scale2).astype(jnp.bfloat16)
    b2 = jax.random.normal(k5, (1, hidden), jnp.float32) * 0.01
    w3 = (jax.random.normal(k3, (hidden, n_actions), jnp.float32)
          * scale2).astype(jnp.bfloat16)
    b3 = jax.random.normal(k6, (1, n_actions), jnp.float32) * 0.01
    return (w1, b1, w2, b2, w3, b3)


def _ref_forward(x, params):
    """Pure-JAX reference (same bf16 matmul / f32 accumulate recipe)."""
    w1, b1, w2, b2, w3, b3 = params
    h1 = jnp.maximum(
        jnp.dot(x.astype(jnp.bfloat16), w1,
                preferred_element_type=jnp.float32) + b1, 0.0)
    h2 = jnp.maximum(
        jnp.dot(h1.astype(jnp.bfloat16), w2,
                preferred_element_type=jnp.float32) + b2, 0.0)
    logits = jnp.dot(h2.astype(jnp.bfloat16), w3,
                     preferred_element_type=jnp.float32) + b3
    return jax.nn.softmax(logits, axis=-1)


def _check(batch, input_dims, n_actions, key):
    kx, kp = jax.random.split(key)
    x = jax.random.normal(kx, (batch, input_dims), jnp.float32)
    params = init_params(kp, input_dims, n_actions)

    probs = jax.block_until_ready(actor_net_forward(x, params))
    ref = _ref_forward(x, params)

    assert probs.shape == (batch, n_actions)
    assert jnp.allclose(jnp.sum(probs, axis=-1), 1.0, atol=2e-3)
    assert jnp.allclose(probs, ref, atol=2e-3, rtol=2e-3)
    return probs


if __name__ == "__main__":
    key = jax.random.PRNGKey(0)
    k_small, k_big = jax.random.split(key)

    # Small-shape check consistent with the module (single rollout minibatch).
    _check(batch=8, input_dims=32, n_actions=8, key=k_small)

    # Multi-tile check (exercises the 2-step grid and the ragged final tile).
    _check(batch=260, input_dims=32, n_actions=8, key=k_big)

    # TODO(synk): torch.distributions.Categorical / Adam optimizer state are
    # host-side objects with no kernel equivalent; the returned probabilities
    # fully parameterize the Categorical distribution.
    print("KERNEL_OK")
</pallas_src>

<mosaic_0001>
module attributes {stable_mosaic.version = 11 : i64} {
  func.func @actor_kernel(%arg0: i32, %arg1: memref<8x32xf32, #tpu.memory_space<vmem>>, %arg2: memref<32x256xbf16, #tpu.memory_space<vmem>>, %arg3: memref<1x256xf32, #tpu.memory_space<vmem>>, %arg4: memref<256x256xbf16, #tpu.memory_space<vmem>>, %arg5: memref<1x256xf32, #tpu.memory_space<vmem>>, %arg6: memref<256x8xbf16, #tpu.memory_space<vmem>>, %arg7: memref<1x8xf32, #tpu.memory_space<vmem>>, %arg8: memref<8x8xf32, #tpu.memory_space<vmem>>) attributes {dimension_semantics = [#tpu.dimension_semantics<parallel>], iteration_bounds = array<i64: 1>, scalar_prefetch = 0 : i64, scratch_operands = 0 : i64, tpu.core_type = #tpu.core_type<tc>, window_params = [{transform_indices = @transform_0, window_bounds = array<i64: 8, 32>}, {pipeline_mode = #tpu.pipeline_mode<synchronous>, transform_indices = @transform_1, window_bounds = array<i64: 32, 256>}, {pipeline_mode = #tpu.pipeline_mode<synchronous>, transform_indices = @transform_2, window_bounds = array<i64: 1, 256>}, {pipeline_mode = #tpu.pipeline_mode<synchronous>, transform_indices = @transform_3, window_bounds = array<i64: 256, 256>}, {pipeline_mode = #tpu.pipeline_mode<synchronous>, transform_indices = @transform_4, window_bounds = array<i64: 1, 256>}, {pipeline_mode = #tpu.pipeline_mode<synchronous>, transform_indices = @transform_5, window_bounds = array<i64: 256, 8>}, {pipeline_mode = #tpu.pipeline_mode<synchronous>, transform_indices = @transform_6, window_bounds = array<i64: 1, 8>}, {transform_indices = @transform_7, window_bounds = array<i64: 8, 8>}]} {
    %c0 = arith.constant 0 : index
    %c0_0 = arith.constant 0 : index
    %0 = vector.load %arg1[%c0, %c0_0] : memref<8x32xf32, #tpu.memory_space<vmem>>, vector<8x32xf32>
    %1 = arith.truncf %0 : vector<8x32xf32> to vector<8x32xbf16>
    %c0_1 = arith.constant 0 : index
    %c0_2 = arith.constant 0 : index
    %2 = vector.load %arg2[%c0_1, %c0_2] : memref<32x256xbf16, #tpu.memory_space<vmem>>, vector<32x256xbf16>
    %cst = arith.constant dense<0.000000e+00> : vector<8x256xf32>
    %3 = tpu.matmul %1, %2, %cst {dimension_numbers = #tpu.dot_dimension_numbers<[1], [0], [0], [1], [0, 0, 1, 1], [], []>} : vector<8x32xbf16>, vector<32x256xbf16>, vector<8x256xf32> -> vector<8x256xf32>
    %c0_3 = arith.constant 0 : index
    %c0_4 = arith.constant 0 : index
    %4 = vector.load %arg3[%c0_3, %c0_4] : memref<1x256xf32, #tpu.memory_space<vmem>>, vector<1x256xf32>
    %5 = vector.broadcast %4 : vector<1x256xf32> to vector<8x256xf32>
    %6 = arith.addf %3, %5 : vector<8x256xf32>
    %cst_5 = arith.constant 0.000000e+00 : f32
    %7 = vector.broadcast %cst_5 : f32 to vector<8x256xf32>
    %8 = arith.maximumf %6, %7 : vector<8x256xf32>
    %9 = arith.truncf %8 : vector<8x256xf32> to vector<8x256xbf16>
    %c0_6 = arith.constant 0 : index
    %c0_7 = arith.constant 0 : index
    %10 = vector.load %arg4[%c0_6, %c0_7] : memref<256x256xbf16, #tpu.memory_space<vmem>>, vector<256x256xbf16>
    %cst_8 = arith.constant dense<0.000000e+00> : vector<8x256xf32>
    %11 = tpu.matmul %9, %10, %cst_8 {dimension_numbers = #tpu.dot_dimension_numbers<[1], [0], [0], [1], [0, 0, 1, 1], [], []>} : vector<8x256xbf16>, vector<256x256xbf16>, vector<8x256xf32> -> vector<8x256xf32>
    %c0_9 = arith.constant 0 : index
    %c0_10 = arith.constant 0 : index
    %12 = vector.load %arg5[%c0_9, %c0_10] : memref<1x256xf32, #tpu.memory_space<vmem>>, vector<1x256xf32>
    %13 = vector.broadcast %12 : vector<1x256xf32> to vector<8x256xf32>
    %14 = arith.addf %11, %13 : vector<8x256xf32>
    %cst_11 = arith.constant 0.000000e+00 : f32
    %15 = vector.broadcast %cst_11 : f32 to vector<8x256xf32>
    %16 = arith.maximumf %14, %15 : vector<8x256xf32>
    %17 = arith.truncf %16 : vector<8x256xf32> to vector<8x256xbf16>
    %c0_12 = arith.constant 0 : index
    %c0_13 = arith.constant 0 : index
    %18 = vector.load %arg6[%c0_12, %c0_13] : memref<256x8xbf16, #tpu.memory_space<vmem>>, vector<256x8xbf16>
    %cst_14 = arith.constant dense<0.000000e+00> : vector<8x8xf32>
    %19 = tpu.matmul %17, %18, %cst_14 {dimension_numbers = #tpu.dot_dimension_numbers<[1], [0], [0], [1], [0, 0, 1, 1], [], []>} : vector<8x256xbf16>, vector<256x8xbf16>, vector<8x8xf32> -> vector<8x8xf32>
    %c0_15 = arith.constant 0 : index
    %c0_16 = arith.constant 0 : index
    %20 = vector.load %arg7[%c0_15, %c0_16] : memref<1x8xf32, #tpu.memory_space<vmem>>, vector<1x8xf32>
    %21 = vector.broadcast %20 : vector<1x8xf32> to vector<8x8xf32>
    %22 = arith.addf %19, %21 : vector<8x8xf32>
    %cst_17 = arith.constant dense<0xFF800000> : vector<8xf32>
    %23 = vector.multi_reduction <maximumf>, %22, %cst_17 [1] : vector<8x8xf32> to vector<8xf32>
    %24 = vector.shape_cast %23 : vector<8xf32> to vector<8x1xf32>
    %25 = vector.broadcast %24 : vector<8x1xf32> to vector<8x8xf32>
    %26 = arith.subf %22, %25 : vector<8x8xf32>
    %27 = math.exp %26 : vector<8x8xf32>
    %cst_18 = arith.constant dense<0.000000e+00> : vector<8xf32>
    %28 = vector.multi_reduction <add>, %27, %cst_18 [1] : vector<8x8xf32> to vector<8xf32>
    %29 = vector.shape_cast %28 : vector<8xf32> to vector<8x1xf32>
    %30 = vector.broadcast %29 : vector<8x1xf32> to vector<8x8xf32>
    %31 = arith.divf %27, %30 : vector<8x8xf32>
    %c0_19 = arith.constant 0 : index
    %c0_20 = arith.constant 0 : index
    %32 = vector.load %arg8[%c0_19, %c0_20] : memref<8x8xf32, #tpu.memory_space<vmem>>, vector<8x8xf32>
    tpu.vector_store %arg8[%c0_19, %c0_20], %31 {strides = array<i32>} : memref<8x8xf32, #tpu.memory_space<vmem>>, vector<8x8xf32>,
    return
  }
  func.func @transform_0(%arg0: i32) -> (i32, i32) {
    %c0_i32 = arith.constant 0 : i32
    %c0_i32_0 = arith.constant 0 : i32
    return %arg0, %c0_i32 : i32, i32
  }
  func.func @transform_1(%arg0: i32) -> (i32, i32) {
    %c0_i32 = arith.constant 0 : i32
    %c0_i32_0 = arith.constant 0 : i32
    %c0_i32_1 = arith.constant 0 : i32
    return %c0_i32, %c0_i32_0 : i32, i32
  }
  func.func @transform_2(%arg0: i32) -> (i32, i32) {
    %c0_i32 = arith.constant 0 : i32
    %c0_i32_0 = arith.constant 0 : i32
    %c0_i32_1 = arith.constant 0 : i32
    return %c0_i32, %c0_i32_0 : i32, i32
  }
  func.func @transform_3(%arg0: i32) -> (i32, i32) {
    %c0_i32 = arith.constant 0 : i32
    %c0_i32_0 = arith.constant 0 : i32
    %c0_i32_1 = arith.constant 0 : i32
    return %c0_i32, %c0_i32_0 : i32, i32
  }
  func.func @transform_4(%arg0: i32) -> (i32, i32) {
    %c0_i32 = arith.constant 0 : i32
    %c0_i32_0 = arith.constant 0 : i32
    %c0_i32_1 = arith.constant 0 : i32
    return %c0_i32, %c0_i32_0 : i32, i32
  }
  func.func @transform_5(%arg0: i32) -> (i32, i32) {
    %c0_i32 = arith.constant 0 : i32
    %c0_i32_0 = arith.constant 0 : i32
    %c0_i32_1 = arith.constant 0 : i32
    return %c0_i32, %c0_i32_0 : i32, i32
  }
  func.func @transform_6(%arg0: i32) -> (i32, i32) {
    %c0_i32 = arith.constant 0 : i32
    %c0_i32_0 = arith.constant 0 : i32
    %c0_i32_1 = arith.constant 0 : i32
    return %c0_i32, %c0_i32_0 : i32, i32
  }
  func.func @transform_7(%arg0: i32) -> (i32, i32) {
    %c0_i32 = arith.constant 0 : i32
    %c0_i32_0 = arith.constant 0 : i32
    return %arg0, %c0_i32 : i32, i32
  }
}

</mosaic_0001>

<bundles_post_ra>
// kernel: tpu_custom_call.1
= control target key start
LH: loop header
LB: loop body
LE: loop exit
PB: predicated region body
PF: predicated region fallthrough
CT: control target
= control target key end

     0   :  { %12 = vsyncpa [#allocation3], 0  ;;  %s928_s0 = inlined_call_operand.vmem [shape: f32[8,32], index: 0, kind: input, shape index: {}]   ;;  %s929_s1 = inlined_call_operand.vmem [shape: bf16[32,256], index: 1, kind: input, shape index: {}]   ;;  %s930_s2 = inlined_call_operand.vmem [shape: f32[1,256], index: 2, kind: input, shape index: {}]   ;;  %s931_s3 = inlined_call_operand.hbm [shape: bf16[256,256], index: 3, kind: input, shape index: {}]   ;;  %s932_s4 = inlined_call_operand.vmem [shape: f32[1,256], index: 4, kind: input, shape index: {}]   ;;  %s933_s5 = inlined_call_operand.vmem [shape: bf16[256,8], index: 5, kind: input, shape index: {}]   ;;  %s934_s6 = inlined_call_operand.vmem [shape: f32[1,8], index: 6, kind: input, shape index: {}]   ;;  %s935_s7 = inlined_call_operand.hbm [shape: f32[8,8], index: 7, kind: output, shape index: {}]  }
   0x1   :  { %13 = vsyncpa [#allocation4], 0  ;;  %s784_s24 = smov [#allocation2]   ;;  %s736_s28 = scalar_lea.hbm %s931_s3, 4096 }
   0x2   :  { %s25_s25 = sshll.u32 %s784_s24, 4  ;;  %p737_p0 = scmp.ne.s32.totalorder %s931_s3, %s736_s28  ;;  %s26_s25 = int_to_ptr.vmem [resolvable:$true] %s25_s25 }
   0x3   :  { %p740_p1 = scmp.lt.u32.totalorder %s736_s28, %s931_s3 }
   0x5   :  { %p742_p2 = pnand %p740_p1, %p737_p0 }
   0x7   :  { %745 = shalt.err (!%p742_p2)
}
   0x8   :  { %s746_s10 = scalar_lea.vmem %s26_s25, 4096  ;;  %p751_p4 = scmp.lt.s32.totalorder %s26_s25, %s26_s25 }
   0x9   :  { %p747_p3 = scmp.ne.s32.totalorder %s26_s25, %s746_s10  ;;  %p752_p5 = scmp.lt.s32.totalorder %s746_s10, %s746_s10 }
   0xb   :  { %p753_p6 = por %p752_p5, %p751_p4 }
   0xd   :  { %p754_p7 = pnand %p753_p6, %p747_p3 }
   0xf   :  { %757 = shalt.err (!%p754_p7)
}
  0x10   :  { %s785_s11 = smov 128   ;;  %s786_s12 = smov 8  }
  0x11   :  { %31 = dma.hbm_to_vmem [thread:$0]  %s931_s3, 4096, %s26_s25, [#allocation3], %s785_s11, %s785_s11, %s786_s12  }
  0x12   :  { %780 = dma.done.wait [#allocation3], 4096  }
  0x13   :  { %781 = vsyncadd [#allocation3], 4294963200  ;;  %v787_v0 = vmov 0   ;;  %v662_v1 = vld [vmem:[%s929_s1 + $0x4] ss:$8 sps:$4 sm:$0xff]   ;;  %vm80_vm0 = vcmask 261120   ;;  %v50_v51 = vlaneseq }
  0x14   :  { %116 = vmatprep.mubr.bf16.mxu0 %v787_v0  ;;  %v664_v2 = vld [vmem:[%s929_s1] ss:$8 sps:$4 sm:$0xff]   ;;  %84 = vmatprep.subr.bf16.mxu0 %v662_v1  ;;  %v665_v3 = vld [vmem:[%s929_s1 + $0x14] ss:$8 sps:$4 sm:$0xff]   ;;  %v667_v4 = vld [vmem:[%s929_s1 + $0x10] ss:$8 sps:$4 sm:$0xff]  }
  0x15   :  { %v42_v5 = vld [vmem:[%s928_s0] sm:$0xff]  ;;  %85 = vmatpush1.bf16.msra.mxu0 %v664_v2  ;;  %v671_v8 = vld [vmem:[#allocation2 + $0x14] ss:$8 sps:$4 sm:$0xff]   ;;  %v673_v10 = vld [vmem:[#allocation2 + $0x10] ss:$8 sps:$4 sm:$0xff]   ;;  %v51_v52 = vshrl.u32 %v50_v51, 7 }
  0x16   :  { %v668_v6 = vld [vmem:[#allocation2 + $0x4] ss:$8 sps:$4 sm:$0xff]   ;;  %86 = vmatprep.subr.bf16.mxu0 %v665_v3  ;;  %v670_v7 = vld [vmem:[#allocation2] ss:$8 sps:$4 sm:$0xff]   ;;  %v43_v9 = vpack.c.bf16 %v42_v5, %v42_v5  ;;  %v677_v13 = vld [vmem:[#allocation2 + $0x34] ss:$8 sps:$4 sm:$0xff]  }
  0x17   :  { %333 = vmatprep.subr.bf16.mxu1 %v668_v6  ;;  %v674_v11 = vld [vmem:[#allocation2 + $0x24] ss:$8 sps:$4 sm:$0xff]   ;;  %v676_v12 = vld [vmem:[#allocation2 + $0x20] ss:$8 sps:$4 sm:$0xff]   ;;  %v679_v14 = vld [vmem:[#allocation2 + $0x30] ss:$8 sps:$4 sm:$0xff]  }
  0x18   :  { %334 = vmatpush1.bf16.msra.mxu1 %v670_v7  ;;  %v680_v15 = vld [vmem:[#allocation2 + $0x44] ss:$8 sps:$4 sm:$0xff]   ;;  %v682_v16 = vld [vmem:[#allocation2 + $0x40] ss:$8 sps:$4 sm:$0xff]   ;;  %v683_v17 = vld [vmem:[#allocation2 + $0x54] ss:$8 sps:$4 sm:$0xff]  }
  0x19   :  { %87 = vmatpush1.bf16.msra.mxu0 %v667_v4  ;;  %335 = vmatprep.subr.bf16.mxu1 %v671_v8  ;;  %v685_v18 = vld [vmem:[#allocation2 + $0x50] ss:$8 sps:$4 sm:$0xff]   ;;  %v686_v19 = vld [vmem:[#allocation2 + $0x64] ss:$8 sps:$4 sm:$0xff]   ;;  %v688_v20 = vld [vmem:[#allocation2 + $0x60] ss:$8 sps:$4 sm:$0xff]  }
  0x1a   :  { %v689_v21 = vld [vmem:[#allocation2 + $0x74] ss:$8 sps:$4 sm:$0xff]   ;;  %v691_v22 = vld [vmem:[#allocation2 + $0x70] ss:$8 sps:$4 sm:$0xff]   ;;  %v692_v23 = vld [vmem:[#allocation2 + $0x84] ss:$8 sps:$4 sm:$0xff]  }
  0x1b   :  { %v694_v24 = vld [vmem:[#allocation2 + $0x80] ss:$8 sps:$4 sm:$0xff]   ;;  %v695_v25 = vld [vmem:[#allocation2 + $0x94] ss:$8 sps:$4 sm:$0xff]   ;;  %v697_v26 = vld [vmem:[#allocation2 + $0x90] ss:$8 sps:$4 sm:$0xff]  }
  0x1c   :  { %585 = vmatmul.mubr.msk.bf16.vlgmr.msra.gmra.mrb[0].mxu0 %vm80_vm0, %v43_v9  ;;  %336 = vmatpush1.bf16.msra.mxu1 %v673_v10  ;;  %v698_v27 = vld [vmem:[#allocation2 + $0xa4] ss:$8 sps:$4 sm:$0xff]   ;;  %v700_v28 = vld [vmem:[#allocation2 + $0xa0] ss:$8 sps:$4 sm:$0xff]   ;;  %v701_v29 = vld [vmem:[#allocation2 + $0xb4] ss:$8 sps:$4 sm:$0xff]  }
  0x1d   :  { %337 = vmatprep.subr.bf16.mxu1 %v674_v11  ;;  %v703_v30 = vld [vmem:[#allocation2 + $0xb0] ss:$8 sps:$4 sm:$0xff]   ;;  %v704_v31 = vld [vmem:[#allocation2 + $0xc4] ss:$8 sps:$4 sm:$0xff]   ;;  %v706_v32 = vld [vmem:[#allocation2 + $0xc0] ss:$8 sps:$4 sm:$0xff]  }
  0x1e   :  { %v707_v33 = vld [vmem:[#allocation2 + $0xd4] ss:$8 sps:$4 sm:$0xff]   ;;  %v709_v34 = vld [vmem:[#allocation2 + $0xd0] ss:$8 sps:$4 sm:$0xff]   ;;  %v710_v35 = vld [vmem:[#allocation2 + $0xe4] ss:$8 sps:$4 sm:$0xff]  }
  0x1f   :  { %v712_v36 = vld [vmem:[#allocation2 + $0xe0] ss:$8 sps:$4 sm:$0xff]   ;;  %v713_v37 = vld [vmem:[#allocation2 + $0xf4] ss:$8 sps:$4 sm:$0xff]   ;;  %v715_v38 = vld [vmem:[#allocation2 + $0xf0] ss:$8 sps:$4 sm:$0xff]  }
  0x20   :  { %338 = vmatpush1.bf16.msra.mxu1 %v676_v12  ;;  %v716_v39 = vld [vmem:[%s933_s5 + $0x40] sm:$0xff]   ;;  %v718_v41 = vld [vmem:[%s933_s5 + $0x48] sm:$0xff]   ;;  %v720_v43 = vld [vmem:[%s933_s5 + $0x50] sm:$0xff]   ;;  %v52_v53 = vsub.s32 0, %v51_v52  ;;  %v56_v55 = vsub.s32 1, %v51_v52  ;;  %vm553_vm1 = vcmask 64512  }
  0x21   :  { %339 = vmatprep.subr.bf16.mxu1 %v677_v13  ;;  %v717_v40 = vld [vmem:[%s933_s5] sm:$0xff]   ;;  %635 = vmatprep.subr.bf16.mxu0 %v716_v39  ;;  %v719_v42 = vld [vmem:[%s933_s5 + $0x8] sm:$0xff]   ;;  %v721_v44 = vld [vmem:[%s933_s5 + $0x10] sm:$0xff]  }
  0x22   :  { %636 = vmatpush3.bf16.msra.mxu0 %v717_v40  ;;  %v722_v45 = vld [vmem:[%s933_s5 + $0x58] sm:$0xff]   ;;  %v724_v47 = vld [vmem:[%s933_s5 + $0x60] sm:$0xff]   ;;  %v726_v49 = vld [vmem:[%s933_s5 + $0x68] sm:$0xff]  }
  0x23   :  { %637 = vmatprep.subr.bf16.mxu0 %v718_v41  ;;  %v723_v46 = vld [vmem:[%s933_s5 + $0x18] sm:$0xff]   ;;  %v725_v48 = vld [vmem:[%s933_s5 + $0x20] sm:$0xff]   ;;  %v727_v50 = vld [vmem:[%s933_s5 + $0x28] sm:$0xff]  }
  0x24   :  { %340 = vmatpush1.bf16.msra.mxu1 %v679_v14  ;;  %v48_v54 = vld [vmem:[%s930_s2] sm:$0x3]  ;;  %v728_v4 = vld [vmem:[%s933_s5 + $0x70] sm:$0xff]   ;;  %v730_v6 = vld [vmem:[%s933_s5 + $0x78] sm:$0xff]  }
  0x25   :  { %341 = vmatprep.subr.bf16.mxu1 %v680_v15  ;;  %v53_v56 = vrot.slane %v48_v54, %v52_v53  ;;  %v57_v57 = vrot.slane %v48_v54, %v56_v55  ;;  %v729_v5 = vld [vmem:[%s933_s5 + $0x30] sm:$0xff]   ;;  %v731_v7 = vld [vmem:[%s933_s5 + $0x38] sm:$0xff]   ;;  %v161_v8 = vld [vmem:[%s932_s4] sm:$0x3]  ;;  %s788_s4 = smov [#allocation5]  }
  0x26   :  { %638 = vmatpush3.bf16.msra.mxu0 %v719_v42  ;;  %v166_v9 = vrot.slane %v161_v8, %v52_v53  ;;  %v170_v10 = vrot.slane %v161_v8, %v56_v55 }
  0x27   :  { %639 = vmatprep.subr.bf16.mxu0 %v720_v43 }
  0x28   :  { %342 = vmatpush1.bf16.msra.mxu1 %v682_v16 }
  0x29   :  { %343 = vmatprep.subr.bf16.mxu1 %v683_v17 }
  0x2a   :  { %640 = vmatpush3.bf16.msra.mxu0 %v721_v44 }
  0x2b   :  { %641 = vmatprep.subr.bf16.mxu0 %v722_v45 }
  0x2c   :  { %344 = vmatpush1.bf16.msra.mxu1 %v685_v18 }
  0x2d   :  { %345 = vmatprep.subr.bf16.mxu1 %v686_v19 }
  0x2e   :  { %642 = vmatpush3.bf16.msra.mxu0 %v723_v46 }
  0x2f   :  { %643 = vmatprep.subr.bf16.mxu0 %v724_v47 }
  0x30   :  { %346 = vmatpush1.bf16.msra.mxu1 %v688_v20 }
  0x31   :  { %347 = vmatprep.subr.bf16.mxu1 %v689_v21 }
  0x32   :  { %644 = vmatpush3.bf16.msra.mxu0 %v725_v48 }
  0x33   :  { %645 = vmatprep.subr.bf16.mxu0 %v726_v49 }
  0x34   :  { %348 = vmatpush1.bf16.msra.mxu1 %v691_v22 }
  0x35   :  { %349 = vmatprep.subr.bf16.mxu1 %v692_v23  ;;  %v618_v23 = vld [vmem:[%s934_s6] ss:$0 sm:$0xff]  ;;  %s572_s6 = sshll.u32 %s788_s4, 4  ;;  %s573_s6 = int_to_ptr.vmem [resolvable:$true] %s572_s6 }
  0x36   :  { %646 = vmatpush3.bf16.msra.mxu0 %v727_v50  ;;  %s758_s9 = scalar_lea.vmem %s573_s6, 128  ;;  %p763_p9 = scmp.lt.s32.totalorder %s573_s6, %s573_s6 }
  0x37   :  { %647 = vmatprep.subr.bf16.mxu0 %v728_v4  ;;  %p759_p8 = scmp.ne.s32.totalorder %s573_s6, %s758_s9  ;;  %p764_p10 = scmp.lt.s32.totalorder %s758_s9, %s758_s9 }
  0x38   :  { %350 = vmatpush1.bf16.msra.mxu1 %v694_v24 }
  0x39   :  { %351 = vmatprep.subr.bf16.mxu1 %v695_v25  ;;  %p765_p11 = por %p764_p10, %p763_p9 }
  0x3a   :  { %648 = vmatpush3.bf16.msra.mxu0 %v729_v5 }
  0x3b   :  { %649 = vmatprep.subr.bf16.mxu0 %v730_v6  ;;  %p766_p12 = pnand %p765_p11, %p759_p8 }
  0x3c   :  { %352 = vmatpush1.bf16.msra.mxu1 %v697_v26 }
  0x3d   :  { %353 = vmatprep.subr.bf16.mxu1 %v698_v27 }
  0x3e   :  { %650 = vmatpush3.bf16.msra.mxu0 %v731_v7 }
  0x40   :  { %354 = vmatpush1.bf16.msra.mxu1 %v700_v28 }
  0x41   :  { %355 = vmatprep.subr.bf16.mxu1 %v701_v29 }
  0x44   :  { %356 = vmatpush1.bf16.msra.mxu1 %v703_v30 }
  0x45   :  { %357 = vmatprep.subr.bf16.mxu1 %v704_v31 }
  0x48   :  { %358 = vmatpush1.bf16.msra.mxu1 %v706_v32 }
  0x49   :  { %359 = vmatprep.subr.bf16.mxu1 %v707_v33 }
  0x4c   :  { %360 = vmatpush1.bf16.msra.mxu1 %v709_v34 }
  0x4d   :  { %361 = vmatprep.subr.bf16.mxu1 %v710_v35 }
  0x50   :  { %362 = vmatpush1.bf16.msra.mxu1 %v712_v36 }
  0x51   :  { %363 = vmatprep.subr.bf16.mxu1 %v713_v37 }
  0x54   :  { %364 = vmatpush1.bf16.msra.mxu1 %v715_v38 }
  0xef   :  { %v118_v58 = vpop.f32.mrb[0].mxu0 }
  0xf0   :  { %v119_v59 = vadd.f32 %v118_v58, %v53_v56  ;;  %v120_v60 = vpop.f32.mrb[1].mxu0 }
  0xf1   :  { %v121_v61 = vadd.f32 %v120_v60, %v57_v57  ;;  %v122_v62 = vpop.f32.mrb[2].mxu0 }
  0xf2   :  { %v125_v63 = vmax.f32 %v119_v59, 0.0  ;;  %v123_v0 = vpop.f32.mrb[3].mxu0 }
  0xf3   :  { %v126_v1 = vmax.f32 %v121_v61, 0.0 }
  0xf4   :  { %v127_v3 = vpack.c.bf16 %v125_v63, %v125_v63 }
  0xf5   :  { %v128_v2 = vpack.c.bf16 %v126_v1, %v126_v1 }
  0xf7   :  { %365 = vmatprep.mubr.bf16.mxu1 %v128_v2 }
  0xf8   :  { %366 = vmatmul.mubr.bf16.vlgmr.msra.gmra.mrb[0].mxu1 %v127_v3 }
 0x1cb   :  { %v367_v11 = vpop.f32.mrb[0].mxu1 }
 0x1cc   :  { %v368_v12 = vadd.f32 %v367_v11, %v166_v9  ;;  %v369_v13 = vpop.f32.mrb[1].mxu1 }
 0x1cd   :  { %v370_v14 = vadd.f32 %v369_v13, %v170_v10  ;;  %v371_v15 = vpop.f32.mrb[2].mxu1 }
 0x1ce   :  { %v374_v16 = vmax.f32 %v368_v12, 0.0  ;;  %v372_v17 = vpop.f32.mrb[3].mxu1 }
 0x1cf   :  { %v375_v18 = vmax.f32 %v370_v14, 0.0 }
 0x1d0   :  { %v376_v20 = vpack.c.bf16 %v374_v16, %v374_v16 }
 0x1d1   :  { %v377_v19 = vpack.c.bf16 %v375_v18, %v375_v18 }
 0x1d3   :  { %545 = vmatprep.mubr.bf16.mxu0 %v377_v19 }
 0x1d4   :  { %546 = vmatmul.mubr.bf16.vlgmr.msra.gmra.mrb[4].mxu0 %v376_v20 }
 0x2a7   :  { %v651_v21 = vpop.f32.mrb[4].mxu0 }
 0x2a8   :  { %v652_v22 = vpop.f32.mrb[5].mxu0 }
 0x2a9   :  { %v653_v24 = vadd.f32 %v652_v22, %v651_v21  ;;  %v654_v25 = vpop.f32.mrb[6].mxu0 }
 0x2aa   :  { %v655_v26 = vpop.f32.mrb[7].mxu0 }
 0x2ab   :  { %v548_v27 = vadd.f32 %v653_v24, %v618_v23 }
 0x2ad   :  { %v554_v28 = vsel %vm553_vm1, %v548_v27, -inf }
 0x2ae   :  { %555 = vmax.xlane.f32.xlu0 %v554_v28 }
 0x33b   :  { %v556_v29 = vpop.xlane.xlu0 %555 }
 0x33c   :  { %v557_v30 = vsub.f32 %v548_v27, %v556_v29 }
 0x33e   :  { %v558_v31 = vmul.f32 1.442695, %v557_v30 }
 0x340   :  { %732 = vpow2.f32 %v558_v31 }
 0x34a   :  { %v733_v32 = vpop.eup %732 }
 0x34b   :  { %v560_v33 = vsel %vm553_vm1, %v733_v32, 0.0 }
 0x34c   :  { %561 = vadd.xlane.f32.xlu0 %v560_v33 }
 0x3d9   :  { %v562_v34 = vpop.xlane.xlu0 %561 }
 0x3da   :  { %734 = vrcp.f32 %v562_v34 }
 0x3e4   :  { %v735_v35 = vpop.eup %734 }
 0x3e5   :  { %v564_v36 = vmul.f32 %v735_v35, %v733_v32 }
 0x3e7   :  { %565 = vst.msk [vmem:[#allocation5] sm:$0xff] %vm553_vm1, %v564_v36 }
 0x3e8   :  { %769 = shalt.err (!%p766_p12)
}
 0x3e9   :  { %s770_s12 = scalar_lea.hbm %s935_s7, 128 }
 0x3ea   :  { %p771_p13 = scmp.ne.s32.totalorder %s935_s7, %s770_s12  ;;  %p774_p0 = scmp.lt.u32.totalorder %s770_s12, %s935_s7 }
 0x3ec   :  { %p776_p1 = pnand %p774_p0, %p771_p13 }
 0x3ee   :  { %779 = shalt.err (!%p776_p1)
}
 0x3ef   :  { %575 = dma.vmem_to_hbm [thread:$0]  %s573_s6, 128, %s935_s7, [#allocation4]  }
 0x3f0   :  { %782 = dma.done.wait [#allocation4], 128  }
 0x3f1   :  { %783 = vsyncadd [#allocation4], 4294967168 }
 0x3f2   :  { %579 = vsyncpa [#allocation3], 1 }
 0x3f3   :  { %580 = vsyncpa [#allocation4], 1 }

</bundles_post_ra>
